<compile_context>
chip_gen: v5e
topology: v5e:2x2
jax: 0.10.0
libtpu: 0.0.40
codegen_flags: <defaults>
</compile_context>

<pallas_src>
import functools

import jax
import jax.numpy as jnp
import numpy as np
from jax import lax
from jax.experimental import pallas as pl
from jax.experimental.pallas import tpu as pltpu

EPS = 1e-12  # F.normalize eps


def _quantizer_kernel(z_ref, wz_t_ref, code_norm_ref, c_sq_ref, wq_t_ref,
                      q_ref, codes_ref, loss_ref,
                      *, n_valid_rows, tm, tc, num_chunks):
    # Small grid-invariant operands: load once per grid step, reuse per chunk.
    wz_t = wz_t_ref[...]                 # (D, dbn)
    wq_t = wq_t_ref[...]                 # (dbn, D)
    code_norm = code_norm_ref[...]       # (nc, dbn)
    c_sq = c_sq_ref[...]                 # (nc, 1)
    n_codes = code_norm.shape[0]

    tile_row0 = pl.program_id(0) * tm

    def process_chunk(c, loss_acc):
        if isinstance(c, int):           # static single-chunk specialization
            start = c * tc
        else:
            start = pl.multiple_of(c * tc, tc)

        # --- z_linear + L2 normalize (rsqrt -> EUP slot, no divide) ----------
        z = z_ref[pl.ds(start, tc), :].astype(jnp.float32)           # (tc, D)
        zp = jnp.dot(z, wz_t, preferred_element_type=jnp.float32)    # (tc, dbn)
        z_sumsq = jnp.sum(zp * zp, axis=-1, keepdims=True)           # (tc, 1)
        z_norm = zp * lax.rsqrt(jnp.maximum(z_sumsq, EPS * EPS))     # (tc, dbn)

        # --- distances, transposed: codes on sublanes, rows on lanes ---------
        zc_t = lax.dot_general(code_norm, z_norm,
                               dimension_numbers=(((1,), (1,)), ((), ())),
                               preferred_element_type=jnp.float32)   # (nc, tc)
        dist_t = c_sq - 2.0 * zc_t                                   # (nc, tc)

        # --- argmin over codes (first occurrence, like torch.argmin) ---------
        # TODO(synk): fuse the two sublane reductions into one pass with a
        # packed monotonic-int key once exact tie-break parity is not required.
        code_idx = lax.broadcasted_iota(jnp.int32, dist_t.shape, 0)  # (nc, tc)
        dmin = jnp.min(dist_t, axis=0, keepdims=True)                # (1, tc)
        codes_row = jnp.min(jnp.where(dist_t == dmin, code_idx, n_codes),
                            axis=0, keepdims=True)                   # (1, tc)
        codes_ref[pl.ds(c, 1), :] = codes_row                        # lane-dense

        # --- q_norm = one_hot(codes)^T @ code_norm (MXU) ----------------------
        # TODO(synk): for very large n_codes tile the codebook axis with a
        # running (min, argmin) + gather instead of a full one-hot matmul.
        y_t = (code_idx == codes_row).astype(jnp.float32)            # (nc, tc)
        q_norm = lax.dot_general(y_t, code_norm,
                                 dimension_numbers=(((0,), (0,)), ((), ())),
                                 preferred_element_type=jnp.float32)  # (tc, dbn)

        # --- partial quantize loss (masked only if padded rows can appear) ---
        diff = q_norm - z_norm
        row_sq = jnp.sum(diff * diff, axis=-1, keepdims=True)        # (tc, 1)
        if n_valid_rows % tm != 0:
            row_idx = (tile_row0 + start
                       + lax.broadcasted_iota(jnp.int32, (tc, 1), 0))
            row_sq = jnp.where(row_idx < n_valid_rows, row_sq, 0.0)

        # --- q_linear on straight-through value (== q_norm in forward) -------
        q_chunk = jnp.dot(q_norm, wq_t, preferred_element_type=jnp.float32)
        q_ref[pl.ds(start, tc), :] = q_chunk.astype(q_ref.dtype)     # (tc, D)

        return loss_acc + jnp.sum(row_sq, keepdims=True)             # (1, 1)

    zero = jnp.zeros((1, 1), jnp.float32)
    if num_chunks == 1:
        total = process_chunk(0, zero)
    else:
        total = lax.fori_loop(0, num_chunks, process_chunk, zero)
    loss_ref[...] = total


def _round_up(x, m):
    return (x + m - 1) // m * m


def _plan_tiles(N, D, dbn, n_codes, z_itemsize, q_itemsize, tm_request):
    """Static tile planning against a per-generation VMEM budget."""
    try:
        vmem_cap = int(pltpu.get_tpu_info().vmem_capacity_bytes)
    except Exception:
        vmem_cap = 64 * 1024 * 1024          # conservative (v7x-sized) fallback
    # Explicit scoped-VMEM request: ~96 MiB on v5e/v6e (128 MiB physical),
    # ~48 MiB on v7x (64 MiB physical); plan tiles against ~80% of it.
    vmem_limit = min(vmem_cap * 3 // 4, 96 * 1024 * 1024)
    vmem_budget = vmem_limit * 4 // 5

    # Inner row chunk bounds vreg pressure of the (n_codes, tc) intermediates.
    tc = min(512, _round_up(min(max(N, 1), 512), 16))

    # Working set that scales with tm: double-buffered z-in and q-out blocks.
    per_row = 2 * D * z_itemsize + 2 * D * q_itemsize + 2 * 4
    fixed = (2 * 4 * (D * dbn + n_codes * dbn + n_codes + dbn * D)   # weights
             + 2 * 8 * tc * 4                                        # codes block
             + 4 * tc * (5 * n_codes + 3 * dbn + 2 * D))             # chunk scratch
    tm_cap = max(tc, (vmem_budget - fixed) // per_row)

    tm = tm_request if tm_request is not None else 8192
    tm_eff = min(tm, tm_cap, _round_up(N, tc))
    # Keep >= 4 grid steps when there is enough work (v7x: 2 TensorCores; also
    # keeps the BlockSpec pipeline busy) instead of one giant tile.
    if N >= 4 * tc:
        tm_eff = min(tm_eff, _round_up(-(-N // 4), tc))
    tm_eff = max(tc, tm_eff // tc * tc)
    num_tiles = -(-N // tm_eff)
    num_chunks = tm_eff // tc
    return tm_eff, tc, num_tiles, num_chunks, vmem_limit


@functools.partial(jax.jit,
                   static_argnames=("tm_eff", "tc", "num_tiles", "num_chunks",
                                    "vmem_limit", "io_dtype", "q_dtype"))
def _quantizer_pallas(z, codebook, w_z, w_q, *, tm_eff, tc, num_tiles,
                      num_chunks, vmem_limit, io_dtype, q_dtype):
    B, T, D = z.shape
    n_codes, dbn = codebook.shape
    N = B * T

    # HBM stream for z: one cast (bf16 by default halves the dominant read);
    # no padding copy — the last grid block overruns and is masked.
    z_flat = z.reshape(N, D).astype(io_dtype)

    # Grid-invariant codebook / weight prep hoisted out of the kernel.
    cb = codebook.astype(jnp.float32)
    code_norm = cb / jnp.maximum(
        jnp.linalg.norm(cb, axis=-1, keepdims=True), EPS)            # (nc, dbn)
    c_sq = jnp.sum(code_norm * code_norm, axis=-1, keepdims=True)    # (nc, 1)
    wz_t = w_z.T.astype(jnp.float32)   # (D, dbn)
    wq_t = w_q.T.astype(jnp.float32)   # (dbn, D)

    kernel = functools.partial(_quantizer_kernel, n_valid_rows=N,
                               tm=tm_eff, tc=tc, num_chunks=num_chunks)

    q_flat, codes3, loss_part = pl.pallas_call(
        kernel,
        out_shape=(
            jax.ShapeDtypeStruct((N, D), q_dtype),
            jax.ShapeDtypeStruct((num_tiles, num_chunks, tc), jnp.int32),
            jax.ShapeDtypeStruct((num_tiles, 1), jnp.float32),
        ),
        grid_spec=pltpu.PrefetchScalarGridSpec(
            num_scalar_prefetch=0,
            grid=(num_tiles,),
            in_specs=[
                pl.BlockSpec((tm_eff, D), lambda i: (i, 0)),       # z rows
                pl.BlockSpec((D, dbn), lambda i: (0, 0)),          # Wz^T
                pl.BlockSpec((n_codes, dbn), lambda i: (0, 0)),    # code_norm
                pl.BlockSpec((n_codes, 1), lambda i: (0, 0)),      # ||code||^2
                pl.BlockSpec((dbn, D), lambda i: (0, 0)),          # Wq^T
            ],
            out_specs=[
                pl.BlockSpec((tm_eff, D), lambda i: (i, 0)),                 # q
                pl.BlockSpec((None, num_chunks, tc), lambda i: (i, 0, 0)),   # codes
                pl.BlockSpec((1, 1), lambda i: (i, 0)),                      # loss
            ],
        ),
        compiler_params=pltpu.CompilerParams(
            dimension_semantics=("parallel",),
            vmem_limit_bytes=int(vmem_limit)),
    )(z_flat, wz_t, code_norm, c_sq, wq_t)

    q = q_flat.reshape(B, T, D)
    codes = codes3.reshape(num_tiles * num_chunks * tc)[:N].reshape(B, T)
    # mse(q_norm, sg(z_norm)) + 0.25*mse(sg(q_norm), z_norm) -> 1.25*mean(diff^2)
    quantize_loss = 1.25 * jnp.sum(loss_part) / (N * dbn)
    return q, codes, quantize_loss


def quantizer_forward(z, codebook, w_z, w_q, *, tm=None,
                      io_dtype=jnp.bfloat16, q_dtype=jnp.float32):
    """z: (B,T,hidden_dim); codebook: (n_codes, bottleneck_dim);
    w_z: (bottleneck_dim, hidden_dim); w_q: (hidden_dim, bottleneck_dim)."""
    B, T, D = z.shape
    n_codes, dbn = codebook.shape
    N = B * T
    tm_eff, tc, num_tiles, num_chunks, vmem_limit = _plan_tiles(
        N, D, dbn, n_codes,
        jnp.dtype(io_dtype).itemsize, jnp.dtype(q_dtype).itemsize, tm)
    return _quantizer_pallas(z, codebook, w_z, w_q,
                             tm_eff=tm_eff, tc=tc, num_tiles=num_tiles,
                             num_chunks=num_chunks, vmem_limit=vmem_limit,
                             io_dtype=io_dtype, q_dtype=q_dtype)


def _reference(z, codebook, w_z, w_q):
    zp = jnp.einsum("btd,kd->btk", z, w_z)
    z_norm = zp / jnp.maximum(jnp.linalg.norm(zp, axis=-1, keepdims=True), EPS)
    cn = codebook / jnp.maximum(jnp.linalg.norm(codebook, axis=-1, keepdims=True), EPS)
    zf = z_norm.reshape(-1, z_norm.shape[-1])
    dist = (jnp.sum(zf ** 2, 1, keepdims=True) - 2 * zf @ cn.T
            + jnp.sum(cn.T ** 2, 0, keepdims=True))
    codes = jnp.argmin(dist, axis=-1).reshape(z.shape[0], z.shape[1])
    q_norm = cn[codes]
    loss = 1.25 * jnp.mean((q_norm - z_norm) ** 2)
    q = jnp.einsum("btk,dk->btd", q_norm, w_q)
    return q, codes, loss, dist, cn


if __name__ == "__main__":
    # hp: hidden_dim=32, bottleneck_dim=16, n_codes=64 ; input B=2, T=8
    B, T, hidden_dim, bottleneck_dim, n_codes = 2, 8, 32, 16, 64

    key = jax.random.PRNGKey(0)
    k_z, k_cb, k_wz, k_wq, k_z2 = jax.random.split(key, 5)
    z = jax.random.normal(k_z, (B, T, hidden_dim), jnp.float32)
    codebook = jax.random.normal(k_cb, (n_codes, bottleneck_dim), jnp.float32)
    # Deterministic synthetic weights (nn.Linear without bias).
    w_z = jax.random.normal(k_wz, (bottleneck_dim, hidden_dim), jnp.float32) * 0.1
    w_q = jax.random.normal(k_wq, (hidden_dim, bottleneck_dim), jnp.float32) * 0.1

    # ---- small smoke test (single tile / single chunk), exact f32 streaming --
    q, codes, loss = quantizer_forward(z, codebook, w_z, w_q,
                                       io_dtype=jnp.float32)
    jax.block_until_ready((q, codes, loss))
    q_ref, codes_ref, loss_ref, _, _ = _reference(z, codebook, w_z, w_q)
    np.testing.assert_allclose(np.asarray(q), np.asarray(q_ref), atol=1e-4, rtol=1e-4)
    np.testing.assert_array_equal(np.asarray(codes), np.asarray(codes_ref))
    np.testing.assert_allclose(float(loss), float(loss_ref), atol=1e-5, rtol=1e-5)

    # ---- larger run: multi-tile / multi-chunk / partial-last-block path with
    # default bf16 z streaming.  Compare against a reference fed the same
    # bf16-rounded z; codes are checked as near-optimal (ties may flip). -------
    T2 = 2000
    z2 = jax.random.normal(k_z2, (B, T2, hidden_dim), jnp.float32)
    q2, codes2, loss2 = quantizer_forward(z2, codebook, w_z, w_q)  # bf16 stream
    jax.block_until_ready((q2, codes2, loss2))

    z2_rnd = z2.astype(jnp.bfloat16).astype(jnp.float32)
    q2_ref, codes2_ref, loss2_ref, dist2, cn2 = _reference(z2_rnd, codebook, w_z, w_q)

    codes2_np = np.asarray(codes2).reshape(-1)
    assert codes2_np.min() >= 0 and codes2_np.max() < n_codes
    d_sel = np.asarray(dist2)[np.arange(B * T2), codes2_np]
    d_min = np.asarray(dist2).min(axis=1)
    assert np.all(d_sel <= d_min + 5e-3), "selected codes are not near-optimal"
    q2_from_codes = jnp.einsum("btk,dk->btd", cn2[codes2], w_q)
    np.testing.assert_allclose(np.asarray(q2), np.asarray(q2_from_codes),
                               atol=3e-3, rtol=3e-3)
    np.testing.assert_allclose(float(loss2), float(loss2_ref), atol=1e-4, rtol=5e-3)

    print("KERNEL_OK")
</pallas_src>

<mosaic_0001>
module attributes {stable_mosaic.version = 11 : i64} {
  func.func @_quantizer_kernel(%arg0: i32, %arg1: memref<16x32xf32, #tpu.memory_space<vmem>>, %arg2: memref<32x16xf32, #tpu.memory_space<vmem>>, %arg3: memref<64x16xf32, #tpu.memory_space<vmem>>, %arg4: memref<64x1xf32, #tpu.memory_space<vmem>>, %arg5: memref<16x32xf32, #tpu.memory_space<vmem>>, %arg6: memref<16x32xf32, #tpu.memory_space<vmem>>, %arg7: memref<1x1x16xi32, #tpu.memory_space<vmem>>, %arg8: memref<1x1xf32, #tpu.memory_space<vmem>>) attributes {dimension_semantics = [#tpu.dimension_semantics<parallel>], iteration_bounds = array<i64: 1>, scalar_prefetch = 0 : i64, scratch_operands = 0 : i64, tpu.core_type = #tpu.core_type<tc>, window_params = [{transform_indices = @transform_0, window_bounds = array<i64: 16, 32>}, {pipeline_mode = #tpu.pipeline_mode<synchronous>, transform_indices = @transform_1, window_bounds = array<i64: 32, 16>}, {pipeline_mode = #tpu.pipeline_mode<synchronous>, transform_indices = @transform_2, window_bounds = array<i64: 64, 16>}, {pipeline_mode = #tpu.pipeline_mode<synchronous>, transform_indices = @transform_3, window_bounds = array<i64: 64, 1>}, {pipeline_mode = #tpu.pipeline_mode<synchronous>, transform_indices = @transform_4, window_bounds = array<i64: 16, 32>}, {transform_indices = @transform_5, window_bounds = array<i64: 16, 32>}, {transform_indices = @transform_6, window_bounds = array<i64: 1, 1, 16>}, {transform_indices = @transform_7, window_bounds = array<i64: 1, 1>}]} {
    %c0 = arith.constant 0 : index
    %c0_0 = arith.constant 0 : index
    %0 = vector.load %arg2[%c0, %c0_0] : memref<32x16xf32, #tpu.memory_space<vmem>>, vector<32x16xf32>
    %c0_1 = arith.constant 0 : index
    %c0_2 = arith.constant 0 : index
    %1 = vector.load %arg5[%c0_1, %c0_2] : memref<16x32xf32, #tpu.memory_space<vmem>>, vector<16x32xf32>
    %c0_3 = arith.constant 0 : index
    %c0_4 = arith.constant 0 : index
    %2 = vector.load %arg3[%c0_3, %c0_4] : memref<64x16xf32, #tpu.memory_space<vmem>>, vector<64x16xf32>
    %c0_5 = arith.constant 0 : index
    %c0_6 = arith.constant 0 : index
    %3 = vector.load %arg4[%c0_5, %c0_6] : memref<64x1xf32, #tpu.memory_space<vmem>>, vector<64x1xf32>
    %cst = arith.constant 0.000000e+00 : f32
    %4 = vector.broadcast %cst : f32 to vector<1x1xf32>
    %c0_7 = arith.constant 0 : index
    %c0_8 = arith.constant 0 : index
    %5 = vector.load %arg1[%c0_7, %c0_8] : memref<16x32xf32, #tpu.memory_space<vmem>>, vector<16x32xf32>
    %cst_9 = arith.constant dense<0.000000e+00> : vector<16x16xf32>
    %6 = tpu.matmul %5, %0, %cst_9 {dimension_numbers = #tpu.dot_dimension_numbers<[1], [0], [0], [1], [0, 0, 1, 1], [], []>} : vector<16x32xf32>, vector<32x16xf32>, vector<16x16xf32> -> vector<16x16xf32>
    %7 = arith.mulf %6, %6 : vector<16x16xf32>
    %cst_10 = arith.constant dense<0.000000e+00> : vector<16xf32>
    %8 = vector.multi_reduction <add>, %7, %cst_10 [1] : vector<16x16xf32> to vector<16xf32>
    %9 = vector.shape_cast %8 : vector<16xf32> to vector<16x1xf32>
    %cst_11 = arith.constant 1.000000e-24 : f32
    %10 = vector.broadcast %cst_11 : f32 to vector<16x1xf32>
    %11 = arith.maximumf %9, %10 : vector<16x1xf32>
    %12 = math.rsqrt %11 : vector<16x1xf32>
    %13 = vector.broadcast %12 : vector<16x1xf32> to vector<16x16xf32>
    %14 = arith.mulf %6, %13 : vector<16x16xf32>
    %cst_12 = arith.constant dense<0.000000e+00> : vector<64x16xf32>
    %15 = tpu.matmul %2, %14, %cst_12 {dimension_numbers = #tpu.dot_dimension_numbers<[1], [1], [0], [0], [0, 0, 1, 0], [], []>} : vector<64x16xf32>, vector<16x16xf32>, vector<64x16xf32> -> vector<64x16xf32>
    %cst_13 = arith.constant 2.000000e+00 : f32
    %16 = vector.broadcast %cst_13 : f32 to vector<64x16xf32>
    %17 = arith.mulf %16, %15 : vector<64x16xf32>
    %18 = vector.broadcast %3 : vector<64x1xf32> to vector<64x16xf32>
    %19 = arith.subf %18, %17 : vector<64x16xf32>
    %20 = tpu.iota {dimensions = array<i32: 0>} : vector<64x16xi32>
    %cst_14 = arith.constant dense<0x7F800000> : vector<16xf32>
    %21 = vector.multi_reduction <minimumf>, %19, %cst_14 [0] : vector<64x16xf32> to vector<16xf32>
    %22 = vector.shape_cast %21 : vector<16xf32> to vector<1x16xf32>
    %23 = vector.broadcast %22 : vector<1x16xf32> to vector<64x16xf32>
    %24 = arith.cmpf oeq, %19, %23 : vector<64x16xf32>
    %c64_i32 = arith.constant 64 : i32
    %25 = vector.broadcast %c64_i32 : i32 to vector<64x16xi32>
    %26 = arith.select %24, %20, %25 : vector<64x16xi1>, vector<64x16xi32>
    %cst_15 = arith.constant dense<2147483647> : vector<16xi32>
    %27 = vector.multi_reduction <minsi>, %26, %cst_15 [0] : vector<64x16xi32> to vector<16xi32>
    %28 = vector.shape_cast %27 : vector<16xi32> to vector<1x16xi32>
    %c0_16 = arith.constant 0 : index
    %c0_17 = arith.constant 0 : index
    %c0_18 = arith.constant 0 : index
    %29 = vector.load %arg7[%c0_16, %c0_17, %c0_18] : memref<1x1x16xi32, #tpu.memory_space<vmem>>, vector<1x1x16xi32>
    %30 = vector.shape_cast %29 : vector<1x1x16xi32> to vector<1x16xi32>
    %31 = vector.shape_cast %28 : vector<1x16xi32> to vector<1x1x16xi32>
    tpu.vector_store %arg7[%c0_16, %c0_17, %c0_18], %31 {strides = array<i32>} : memref<1x1x16xi32, #tpu.memory_space<vmem>>, vector<1x1x16xi32>,
    %32 = vector.broadcast %28 : vector<1x16xi32> to vector<64x16xi32>
    %33 = arith.cmpi eq, %20, %32 : vector<64x16xi32>
    %34 = arith.extui %33 : vector<64x16xi1> to vector<64x16xi32>
    %35 = arith.sitofp %34 : vector<64x16xi32> to vector<64x16xf32>
    %cst_19 = arith.constant dense<0.000000e+00> : vector<16x16xf32>
    %36 = tpu.matmul %35, %2, %cst_19 {dimension_numbers = #tpu.dot_dimension_numbers<[0], [0], [1], [1], [0, 1, 1, 1], [], []>} : vector<64x16xf32>, vector<64x16xf32>, vector<16x16xf32> -> vector<16x16xf32>
    %37 = arith.subf %36, %14 : vector<16x16xf32>
    %38 = arith.mulf %37, %37 : vector<16x16xf32>
    %cst_20 = arith.constant dense<0.000000e+00> : vector<16xf32>
    %39 = vector.multi_reduction <add>, %38, %cst_20 [1] : vector<16x16xf32> to vector<16xf32>
    %40 = vector.shape_cast %39 : vector<16xf32> to vector<16x1xf32>
    %cst_21 = arith.constant dense<0.000000e+00> : vector<16x32xf32>
    %41 = tpu.matmul %36, %1, %cst_21 {dimension_numbers = #tpu.dot_dimension_numbers<[1], [0], [0], [1], [0, 0, 1, 1], [], []>} : vector<16x16xf32>, vector<16x32xf32>, vector<16x32xf32> -> vector<16x32xf32>
    %c0_22 = arith.constant 0 : index
    %c0_23 = arith.constant 0 : index
    %42 = vector.load %arg6[%c0_22, %c0_23] : memref<16x32xf32, #tpu.memory_space<vmem>>, vector<16x32xf32>
    tpu.vector_store %arg6[%c0_22, %c0_23], %41 {strides = array<i32>} : memref<16x32xf32, #tpu.memory_space<vmem>>, vector<16x32xf32>,
    %43 = vector.shape_cast %40 : vector<16x1xf32> to vector<1x16x1xf32>
    %cst_24 = arith.constant dense<0.000000e+00> : vector<1xf32>
    %44 = vector.multi_reduction <add>, %43, %cst_24 [1, 2] : vector<1x16x1xf32> to vector<1xf32>
    %45 = vector.shape_cast %44 : vector<1xf32> to vector<1x1x1xf32>
    %46 = vector.extract %45[0, 0, 0] : f32 from vector<1x1x1xf32>
    %47 = vector.broadcast %46 : f32 to vector<1x1xf32>
    %48 = arith.addf %4, %47 : vector<1x1xf32>
    %c0_25 = arith.constant 0 : index
    %c0_26 = arith.constant 0 : index
    %49 = vector.load %arg8[%c0_25, %c0_26] : memref<1x1xf32, #tpu.memory_space<vmem>>, vector<1x1xf32>
    tpu.vector_store %arg8[%c0_25, %c0_26], %48 {strides = array<i32>} : memref<1x1xf32, #tpu.memory_space<vmem>>, vector<1x1xf32>,
    return
  }
  func.func @transform_0(%arg0: i32) -> (i32, i32) {
    %c0_i32 = arith.constant 0 : i32
    %c0_i32_0 = arith.constant 0 : i32
    return %arg0, %c0_i32 : i32, i32
  }
  func.func @transform_1(%arg0: i32) -> (i32, i32) {
    %c0_i32 = arith.constant 0 : i32
    %c0_i32_0 = arith.constant 0 : i32
    %c0_i32_1 = arith.constant 0 : i32
    return %c0_i32, %c0_i32_0 : i32, i32
  }
  func.func @transform_2(%arg0: i32) -> (i32, i32) {
    %c0_i32 = arith.constant 0 : i32
    %c0_i32_0 = arith.constant 0 : i32
    %c0_i32_1 = arith.constant 0 : i32
    return %c0_i32, %c0_i32_0 : i32, i32
  }
  func.func @transform_3(%arg0: i32) -> (i32, i32) {
    %c0_i32 = arith.constant 0 : i32
    %c0_i32_0 = arith.constant 0 : i32
    %c0_i32_1 = arith.constant 0 : i32
    return %c0_i32, %c0_i32_0 : i32, i32
  }
  func.func @transform_4(%arg0: i32) -> (i32, i32) {
    %c0_i32 = arith.constant 0 : i32
    %c0_i32_0 = arith.constant 0 : i32
    %c0_i32_1 = arith.constant 0 : i32
    return %c0_i32, %c0_i32_0 : i32, i32
  }
  func.func @transform_5(%arg0: i32) -> (i32, i32) {
    %c0_i32 = arith.constant 0 : i32
    %c0_i32_0 = arith.constant 0 : i32
    return %arg0, %c0_i32 : i32, i32
  }
  func.func @transform_6(%arg0: i32) -> (i32, i32, i32) {
    %c0_i32 = arith.constant 0 : i32
    %c0_i32_0 = arith.constant 0 : i32
    %c0_i32_1 = arith.constant 0 : i32
    return %arg0, %c0_i32, %c0_i32_0 : i32, i32, i32
  }
  func.func @transform_7(%arg0: i32) -> (i32, i32) {
    %c0_i32 = arith.constant 0 : i32
    %c0_i32_0 = arith.constant 0 : i32
    return %arg0, %c0_i32 : i32, i32
  }
}

</mosaic_0001>

<bundles_post_ra>
// kernel: _quantizer_pallas.1
= control target key start
LH: loop header
LB: loop body
LE: loop exit
PB: predicated region body
PF: predicated region fallthrough
CT: control target
= control target key end

     0   :  { %13 = vsyncpa [#allocation3], 0  ;;  %s818_s0 = inlined_call_operand.vmem [shape: f32[16,32], index: 0, kind: input, shape index: {}]   ;;  %s819_s1 = inlined_call_operand.vmem [shape: f32[32,16], index: 1, kind: input, shape index: {}]   ;;  %s820_s2 = inlined_call_operand.vmem [shape: f32[64,16], index: 2, kind: input, shape index: {}]   ;;  %s821_s3 = inlined_call_operand.vmem [shape: f32[64,1], index: 3, kind: input, shape index: {}]   ;;  %s822_s4 = inlined_call_operand.vmem [shape: f32[16,32], index: 4, kind: input, shape index: {}]   ;;  %s823_s5 = inlined_call_operand.hbm [shape: f32[16,32], index: 5, kind: output, shape index: {0}]   ;;  %s824_s6 = inlined_call_operand.vmem [shape: s32[1,1,16], index: 6, kind: output, shape index: {1}]   ;;  %s825_s7 = inlined_call_operand.hbm [shape: f32[1,1], index: 7, kind: output, shape index: {2}]  }
   0x1   :  { %v28_v0 = vld [vmem:[%s819_s1 + $0x18] sm:$0xff]  ;;  %v27_v1 = vld [vmem:[%s819_s1 + $0x10] sm:$0xff]  ;;  %v26_v2 = vld [vmem:[%s819_s1 + $0x8] sm:$0xff] }
   0x2   :  { %68 = vmatpush.msra.mxu0 %v28_v0 }
   0x3   :  { %14 = vsyncpa [#allocation5], 0  ;;  %v25_v3 = vld [vmem:[%s819_s1] sm:$0xff]  ;;  %vm49_vm0 = vcmask 261120   ;;  %v48_v5 = vld [vmem:[%s818_s0 + $0x8] sm:$0xff]  ;;  %vm81_vm1 = vcmask 130048  }
   0x4   :  { %69 = vmatpush.msra.mxu0 %v27_v1  ;;  %v47_v4 = vld [vmem:[%s818_s0] sm:$0xff]  ;;  %v595_v12 = vmov 0   ;;  %v40_v14 = vld [vmem:[%s821_s3 + $0x8] sm:$0xff]  ;;  %v38_v22 = vld [vmem:[%s820_s2 + $0x38] sm:$0xff]  ;;  %s468_s22 = sshll.u32 %s823_s5, 4  ;;  %s597_s23 = smov [#allocation2]   ;;  %s469_s22 = int_to_ptr.hbm [resolvable:$true] %s468_s22 }
   0x5   :  { %536 = vset.pattern.permute.xlu1 %v595_v12  ;;  %v39_v13 = vld [vmem:[%s821_s3] sm:$0xff]  ;;  %537 = vset.pattern.permute.xlu2 %v595_v12  ;;  %v44_v17 = vld [vmem:[%s821_s3 + $0x28] sm:$0xff]  ;;  %v37_v24 = vld [vmem:[%s820_s2 + $0x30] sm:$0xff]  ;;  %s466_s24 = sshll.u32 %s597_s23, 4  ;;  %s598_s25 = smov 128   ;;  %s467_s24 = int_to_ptr.vmem [resolvable:$true] %s466_s24 }
   0x6   :  { %70 = vmatpush.msra.mxu0 %v26_v2  ;;  %193 = vperm.xlu1 %536, %v39_v13   ;;  %v46_v25 = vld [vmem:[%s821_s3 + $0x38] sm:$0xff]  ;;  %v36_v31 = vld [vmem:[%s820_s2 + $0x28] sm:$0xff]  ;;  %v35_v34 = vld [vmem:[%s820_s2 + $0x20] sm:$0xff]  ;;  %s599_s26 = smov 8   ;;  %s600_s27 = smov [#allocation4]  }
   0x7   :  { %538 = vset.pattern.permute.xlu0 %v595_v12  ;;  %389 = vmatpush.msra.mxu2 %v38_v22  ;;  %v34_v37 = vld [vmem:[%s820_s2 + $0x18] sm:$0xff]  ;;  %v33_v39 = vld [vmem:[%s820_s2 + $0x10] sm:$0xff]  ;;  %v43_v42 = vld [vmem:[%s821_s3 + $0x20] sm:$0xff]  ;;  %s482_s28 = sshll.u32 %s600_s27, 4  ;;  %s484_s5 = sshll.u32 %s825_s7, 4  ;;  %s483_s28 = int_to_ptr.vmem [resolvable:$true] %s482_s28  ;;  %s485_s5 = int_to_ptr.hbm [resolvable:$true] %s484_s5 }
   0x8   :  { %71 = vmatpush.msra.mxu0 %v25_v3  ;;  %v41_v41 = vld [vmem:[%s821_s3 + $0x10] sm:$0xff]  ;;  %v32_v43 = vld [vmem:[%s820_s2 + $0x8] sm:$0xff]  ;;  %v31_v46 = vld [vmem:[%s820_s2] sm:$0xff] }
   0x9   :  { %500 = vmatmul.msk.f32.vlgmr.msra.gmra.mxu0 %vm49_vm0, %v47_v4  ;;  %390 = vmatpush.msra.mxu2 %v37_v24  ;;  %v42_v47 = vld [vmem:[%s821_s3 + $0x18] sm:$0xff]  ;;  %v45_v48 = vld [vmem:[%s821_s3 + $0x30] sm:$0xff] }
   0xa   :  { %203 = vperm.xlu2 %537, %v41_v41  }
   0xb   :  { %391 = vmatpush.msra.mxu2 %v36_v31 }
   0xd   :  { %392 = vmatpush.msra.mxu2 %v35_v34 }
   0xe   :  { %198 = vperm.xlu1 %536, %v40_v14  }
   0xf   :  { %393 = vmatpush.msra.mxu2 %v34_v37 }
  0x11   :  { %501 = vmatmul.msk.f32.gmra.mxu0 %vm49_vm0, %v48_v5  ;;  %394 = vmatpush.msra.mxu2 %v33_v39 }
  0x12   :  { %208 = vperm.xlu2 %537, %v42_v47  }
  0x13   :  { %395 = vmatpush.msra.mxu2 %v32_v43 }
  0x15   :  { %396 = vmatpush.msra.mxu2 %v31_v46 }
  0x16   :  { %218 = vperm.xlu1 %536, %v44_v17  }
  0x1a   :  { %223 = vperm.xlu2 %537, %v45_v48  }
  0x1e   :  { %228 = vperm.xlu1 %536, %v46_v25  }
  0x64   :  { %v204_v51 = vpop.permute.xlu2 %203 }
  0x6c   :  { %v209_v57 = vpop.permute.xlu2 %208 }
  0x74   :  { %v224_v3 = vpop.permute.xlu2 %223 }
  0x78   :  { %v194_v49 = vpop.permute.xlu1 %193 }
  0x80   :  { %v199_v50 = vpop.permute.xlu1 %198 }
  0x86   :  { %v661_v6 = vpop.f32.mrf.mxu0 }
  0x87   :  { %v79_v10 = vmul.f32 %v661_v6, %v661_v6 }
  0x88   :  { %v219_v56 = vpop.permute.xlu1 %218 }
  0x89   :  { %v82_v11 = vsel %vm81_vm1, %v79_v10, 0.0 }
  0x8e   :  { %v76_v7 = vpop.f32.mrf.mxu0 }
  0x8f   :  { %v80_v8 = vmul.f32 %v76_v7, %v76_v7 }
  0x90   :  { %v229_v62 = vpop.permute.xlu1 %228 }
  0x91   :  { %v85_v9 = vsel %vm81_vm1, %v80_v8, 0.0 }
  0x92   :  { %86 = vadd.xlane.f32.xlu0 %v85_v9 }
  0x9a   :  { %83 = vadd.xlane.f32.xlu0 %v82_v11 }
  0xae   :  { %213 = vperm.xlu0 %538, %v43_v42  }
 0x105   :  { %v87_v15 = vpop.xlane.xlu0 %86 }
 0x106   :  { %v89_v16 = vmax.f32 %v87_v15, 1e-24 }
 0x108   :  { %539 = vrsqrt.f32 %v89_v16  ;;  %vm106_vm3 = vweird.f32 %v89_v16 }
 0x10d   :  { %v84_v18 = vpop.xlane.xlu0 %83 }
 0x10e   :  { %v540_v19 = vpop.eup %539  ;;  %v88_v20 = vmax.f32 %v84_v18, 1e-24 }
 0x10f   :  { %v101_v21 = vmul.f32 %v540_v19, %v89_v16  ;;  %vm107_vm2 = vweird.f32 %v540_v19 }
 0x110   :  { %541 = vrsqrt.f32 %v88_v20  ;;  %vm108_vm4 = vmor %vm106_vm3, %vm107_vm2  ;;  %vm96_vm6 = vweird.f32 %v88_v20 }
 0x111   :  { %v102_v23 = vmul.f32 %v540_v19, %v101_v21 }
 0x113   :  { %v103_v26 = vmul.f32 0.5, %v102_v23 }
 0x115   :  { %v104_v27 = vsub.f32 1.5, %v103_v26 }
 0x116   :  { %v542_v28 = vpop.eup %541 }
 0x117   :  { %v105_v29 = vmul.f32 %v540_v19, %v104_v27  ;;  %v91_v30 = vmul.f32 %v542_v28, %v88_v20  ;;  %vm97_vm5 = vweird.f32 %v542_v28 }
 0x118   :  { %vm98_vm7 = vmor %vm96_vm6, %vm97_vm5 }
 0x119   :  { %v109_v32 = vsel %vm108_vm4, %v540_v19, %v105_v29  ;;  %v92_v33 = vmul.f32 %v542_v28, %v91_v30 }
 0x11a   :  { %v691_v35 = vmul.f32 %v109_v32, %v76_v7 }
 0x11b   :  { %v93_v36 = vmul.f32 0.5, %v92_v33  ;;  %v239_v33 = vlaneseq }
 0x11c   :  { %502 = vmatpush.xpose.msk.msrb.mxu0 %vm81_vm1, %v691_v35  ;;  %524 = vmatpush.xpose.msk.msra.mxu1 %vm81_vm1, %v691_v35 }
 0x11d   :  { %v94_v38 = vsub.f32 1.5, %v93_v36  ;;  %525 = vmatpush.xpose.msk.msra.mxu3 %vm81_vm1, %v691_v35 }
 0x11f   :  { %v95_v40 = vmul.f32 %v542_v28, %v94_v38 }
 0x120   :  { %v214_v4 = vpop.permute.xlu0 %213 }
 0x121   :  { %v99_v44 = vsel %vm98_vm7, %v542_v28, %v95_v40 }
 0x122   :  { %v715_v45 = vmul.f32 %v99_v44, %v661_v6 }
 0x124   :  { %503 = vmatpush.xpose.msk.msrb.mxu0 %vm81_vm1, %v715_v45  ;;  %526 = vmatpush.xpose.msk.msra.mxu1 %vm81_vm1, %v715_v45 }
 0x125   :  { %527 = vmatpush.xpose.msk.msra.mxu3 %vm81_vm1, %v715_v45 }
 0x127   :  { %504 = vmatmul.msk.f32.vlgmr.msrb.gmra.mxu0 %vm81_vm1, %v31_v46  ;;  %506 = vmatmul.msk.f32.vlgmr.msra.gmra.mxu1 %vm81_vm1, %v33_v39 }
 0x128   :  { %510 = vmatmul.msk.f32.vlgmr.msra.gmra.mxu3 %vm81_vm1, %v37_v24 }
 0x12f   :  { %505 = vmatmul.msk.f32.gmra.mxu0 %vm81_vm1, %v32_v43  ;;  %507 = vmatmul.msk.f32.gmra.mxu1 %vm81_vm1, %v34_v37  ;;  %v748_v37 = vshrl.u32 %v239_v33, 7 }
 0x130   :  { %511 = vmatmul.msk.f32.gmra.mxu3 %vm81_vm1, %v38_v22 }
 0x131   :  { %v751_v40 = vadd.s32 8, %v748_v37  ;;  %v754_v41 = vadd.s32 16, %v748_v37  ;;  %v757_v42 = vadd.s32 24, %v748_v37  ;;  %v760_v44 = vadd.s32 32, %v748_v37 }
 0x132   :  { %v763_v46 = vadd.s32 40, %v748_v37  ;;  %v766_v47 = vadd.s32 48, %v748_v37  ;;  %v769_v48 = vadd.s32 56, %v748_v37 }
 0x137   :  { %508 = vmatmul.msk.f32.gmra.mxu1 %vm81_vm1, %v35_v34 }
 0x13f   :  { %509 = vmatmul.msk.f32.gmra.mxu1 %vm81_vm1, %v36_v31 }
 0x1a4   :  { %v165_v52 = vpop.f32.mrf.mxu1  ;;  %v159_v54 = vpop.f32.mrf.mxu0 }
 0x1a5   :  { %v183_v2 = vmul.f32 2.0, %v159_v54  ;;  %v185_v5 = vmul.f32 2.0, %v165_v52 }
 0x1a7   :  { %v231_v11 = vsub.f32 %v194_v49, %v183_v2  ;;  %v233_v13 = vsub.f32 %v204_v51, %v185_v5 }
 0x1a9   :  { %v250_v22 = vsel %vm81_vm1, %v233_v13, inf  ;;  %v248_v24 = vsel %vm81_vm1, %v231_v11, inf }
 0x1ab   :  { %v177_v53 = vpop.f32.mrf.mxu3 }
 0x1ac   :  { %v168_v55 = vpop.f32.mrf.mxu1  ;;  %v162_v61 = vpop.f32.mrf.mxu0  ;;  %v189_v63 = vmul.f32 2.0, %v177_v53 }
 0x1ad   :  { %v186_v0 = vmul.f32 2.0, %v168_v55  ;;  %v184_v6 = vmul.f32 2.0, %v162_v61 }
 0x1ae   :  { %v237_v8 = vsub.f32 %v224_v3, %v189_v63 }
 0x1af   :  { %v234_v9 = vsub.f32 %v209_v57, %v186_v0  ;;  %v232_v14 = vsub.f32 %v199_v50, %v184_v6 }
 0x1b0   :  { %v256_v17 = vsel %vm81_vm1, %v237_v8, inf }
 0x1b1   :  { %v251_v18 = vsel %vm81_vm1, %v234_v9, inf  ;;  %v249_v23 = vsel %vm81_vm1, %v232_v14, inf  ;;  %v257_v26 = vmin.f32 %v250_v22, %v256_v17 }
 0x1b3   :  { %v180_v58 = vpop.f32.mrf.mxu3 }
 0x1b4   :  { %v171_v59 = vpop.f32.mrf.mxu1  ;;  %v190_v60 = vmul.f32 2.0, %v180_v58 }
 0x1b5   :  { %v187_v1 = vmul.f32 2.0, %v171_v59 }
 0x1b6   :  { %v238_v7 = vsub.f32 %v229_v62, %v190_v60 }
 0x1b7   :  { %v235_v10 = vsub.f32 %v214_v4, %v187_v1 }
 0x1b8   :  { %v258_v15 = vsel %vm81_vm1, %v238_v7, inf }
 0x1b9   :  { %v252_v19 = vsel %vm81_vm1, %v235_v10, inf  ;;  %v259_v21 = vmin.f32 %v251_v18, %v258_v15 }
 0x1ba   :  { %v253_v27 = vmin.f32 %v248_v24, %v252_v19 }
 0x1bb   :  { %v261_v29 = vmin.f32 %v257_v26, %v259_v21  ;;  %v29_v26 = vld [vmem:[%s822_s4] sm:$0xff] }
 0x1bc   :  { %v174_v12 = vpop.f32.mrf.mxu1 }
 0x1bd   :  { %v188_v16 = vmul.f32 2.0, %v174_v12 }
 0x1bf   :  { %v236_v20 = vsub.f32 %v219_v56, %v188_v16 }
 0x1c1   :  { %v254_v25 = vsel %vm81_vm1, %v236_v20, inf }
 0x1c2   :  { %v255_v28 = vmin.f32 %v249_v23, %v254_v25  ;;  %v30_v23 = vld [vmem:[%s822_s4 + $0x8] sm:$0xff] }
 0x1c3   :  { %434 = vmatpush.msrb.mxu3 %v30_v23 }
 0x1c4   :  { %v260_v30 = vmin.f32 %v253_v27, %v255_v28 }
 0x1c5   :  { %435 = vmatpush.msrb.mxu3 %v29_v26 }
 0x1c6   :  { %v262_v31 = vmin.f32 %v260_v30, %v261_v29 }
 0x1c8   :  { %v263_v32 = vrot.slane %v262_v31, 4 }
 0x1ca   :  { %v264_v34 = vmin.f32 %v262_v31, %v263_v32 }
 0x1cc   :  { %v265_v36 = vrot.slane %v264_v34, 2 }
 0x1ce   :  { %v266_v38 = vmin.f32 %v264_v34, %v265_v36 }
 0x1d0   :  { %v267_v39 = vrot.slane %v266_v38, 1 }
 0x1d2   :  { %v268_v43 = vmin.f32 %v266_v38, %v267_v39 }
 0x1d4   :  { %vm269_vm8 = vcmp.eq.f32.partialorder %v231_v11, %v268_v43  ;;  %vm270_vm9 = vcmp.eq.f32.partialorder %v232_v14, %v268_v43  ;;  %vm271_vm10 = vcmp.eq.f32.partialorder %v233_v13, %v268_v43  ;;  %vm272_vm11 = vcmp.eq.f32.partialorder %v234_v9, %v268_v43 }
 0x1d5   :  { %vm273_vm12 = vcmp.eq.f32.partialorder %v235_v10, %v268_v43  ;;  %vm274_vm13 = vcmp.eq.f32.partialorder %v236_v20, %v268_v43  ;;  %vm275_vm14 = vcmp.eq.f32.partialorder %v237_v8, %v268_v43  ;;  %vm276_vm15 = vcmp.eq.f32.partialorder %v238_v7, %v268_v43 }
 0x1d6   :  { %v277_v49 = vsel %vm269_vm8, %v748_v37, 64  ;;  %v278_v50 = vsel %vm270_vm9, %v751_v40, 64  ;;  %v279_v51 = vsel %vm271_vm10, %v754_v41, 64  ;;  %v280_v52 = vsel %vm272_vm11, %v757_v42, 64 }
 0x1d7   :  { %v281_v53 = vsel %vm273_vm12, %v760_v44, 64  ;;  %v282_v54 = vsel %vm274_vm13, %v763_v46, 64  ;;  %v283_v55 = vsel %vm275_vm14, %v766_v47, 64  ;;  %v284_v56 = vsel %vm276_vm15, %v769_v48, 64 }
 0x1d8   :  { %v285_v57 = vsel %vm81_vm1, %v277_v49, 2147483647  ;;  %v286_v58 = vsel %vm81_vm1, %v278_v50, 2147483647  ;;  %v287_v59 = vsel %vm81_vm1, %v279_v51, 2147483647 }
 0x1d9   :  { %v288_v60 = vsel %vm81_vm1, %v280_v52, 2147483647  ;;  %v289_v61 = vsel %vm81_vm1, %v281_v53, 2147483647  ;;  %v292_v62 = vsel %vm81_vm1, %v282_v54, 2147483647 }
 0x1da   :  { %vm290_vm2 = vcmp.lt.s32.totalorder %v285_v57, %v289_v61  ;;  %vm293_vm3 = vcmp.lt.s32.totalorder %v286_v58, %v292_v62  ;;  %v295_v63 = vsel %vm81_vm1, %v283_v55, 2147483647  ;;  %v298_v0 = vsel %vm81_vm1, %v284_v56, 2147483647 }
 0x1db   :  { %v291_v1 = vsel %vm290_vm2, %v285_v57, %v289_v61  ;;  %v294_v2 = vsel %vm293_vm3, %v286_v58, %v292_v62  ;;  %vm296_vm4 = vcmp.lt.s32.totalorder %v287_v59, %v295_v63  ;;  %vm299_vm5 = vcmp.lt.s32.totalorder %v288_v60, %v298_v0 }
 0x1dc   :  { %v297_v3 = vsel %vm296_vm4, %v287_v59, %v295_v63  ;;  %v300_v4 = vsel %vm299_vm5, %v288_v60, %v298_v0  ;;  %vm301_vm6 = vcmp.lt.s32.totalorder %v291_v1, %v294_v2  ;;  %vm316_vm11 = vcmask 122880  }
 0x1dd   :  { %v302_v5 = vsel %vm301_vm6, %v291_v1, %v294_v2  ;;  %vm303_vm7 = vcmp.lt.s32.totalorder %v297_v3, %v300_v4  ;;  %v596_v14 = vmov 0.0  }
 0x1de   :  { %v304_v6 = vsel %vm303_vm7, %v297_v3, %v300_v4  ;;  %vm374_vm7 = vcmask 523264  }
 0x1df   :  { %vm305_vm8 = vcmp.lt.s32.totalorder %v302_v5, %v304_v6 }
 0x1e0   :  { %v306_v7 = vsel %vm305_vm8, %v302_v5, %v304_v6  ;;  %vm445_vm8 = vcmask 7168  }
 0x1e1   :  { %v307_v8 = vrot.slane %v306_v7, 4 }
 0x1e3   :  { %vm308_vm9 = vcmp.lt.s32.totalorder %v306_v7, %v307_v8 }
 0x1e4   :  { %v309_v9 = vsel %vm308_vm9, %v306_v7, %v307_v8 }
 0x1e5   :  { %v310_v10 = vrot.slane %v309_v9, 2 }
 0x1e7   :  { %vm311_vm10 = vcmp.lt.s32.totalorder %v309_v9, %v310_v10 }
 0x1e8   :  { %v312_v11 = vsel %vm311_vm10, %v309_v9, %v310_v10 }
 0x1e9   :  { %v313_v12 = vrot.slane %v312_v11, 1 }
 0x1eb   :  { %vm314_vm12 = vcmp.lt.s32.totalorder %v312_v11, %v313_v12 }
 0x1ec   :  { %v315_v13 = vsel %vm314_vm12, %v312_v11, %v313_v12 }
 0x1ed   :  { %317 = vst.msk [vmem:[%s824_s6] sm:$0x1] %vm316_vm11, %v315_v13  ;;  %vm318_vm13 = vcmp.eq.s32.totalorder %v748_v37, %v315_v13  ;;  %vm319_vm14 = vcmp.eq.s32.totalorder %v751_v40, %v315_v13  ;;  %vm320_vm15 = vcmp.eq.s32.totalorder %v754_v41, %v315_v13  ;;  %vm321_vm2 = vcmp.eq.s32.totalorder %v757_v42, %v315_v13 }
 0x1ee   :  { %v512_v15 = vsel %vm318_vm13, 1.0, %v596_v14  ;;  %v513_v16 = vsel %vm319_vm14, 1.0, %v596_v14  ;;  %v514_v17 = vsel %vm320_vm15, 1.0, %v596_v14  ;;  %v515_v18 = vsel %vm321_vm2, 1.0, %v596_v14 }
 0x1ef   :  { %342 = vxpose.xlu2.b32.start [1/8] (short) (narrow) %v512_v15, 16  ;;  %vm322_vm3 = vcmp.eq.s32.totalorder %v760_v44, %v315_v13  ;;  %vm323_vm4 = vcmp.eq.s32.totalorder %v763_v46, %v315_v13  ;;  %vm324_vm5 = vcmp.eq.s32.totalorder %v766_v47, %v315_v13  ;;  %vm325_vm6 = vcmp.eq.s32.totalorder %v769_v48, %v315_v13 }
 0x1f0   :  { %v516_v19 = vsel %vm322_vm3, 1.0, %v596_v14  ;;  %v517_v20 = vsel %vm323_vm4, 1.0, %v596_v14  ;;  %v518_v21 = vsel %vm324_vm5, 1.0, %v596_v14  ;;  %v519_v22 = vsel %vm325_vm6, 1.0, %v596_v14 }
 0x1f7   :  { %343 = vxpose.xlu2.b32.cont [2/8] (short) (narrow) %v513_v16, 16 }
 0x1ff   :  { %344 = vxpose.xlu2.b32.cont [3/8] (short) (narrow) %v514_v17, 16 }
 0x207   :  { %345 = vxpose.xlu2.b32.cont [4/8] (short) (narrow) %v515_v18, 16 }
 0x20f   :  { %346 = vxpose.xlu2.b32.cont [5/8] (short) (narrow) %v516_v19, 16 }
 0x217   :  { %347 = vxpose.xlu2.b32.cont [6/8] (short) (narrow) %v517_v20, 16 }
 0x21f   :  { %348 = vxpose.xlu2.b32.cont [7/8] (short) (narrow) %v518_v21, 16 }
 0x227   :  { %349 = vxpose.xlu2.b32.end [8/8] (short) (narrow) %v519_v22, 16 }
 0x288   :  { %v358_v24 = vpop.trf.xlu2 }
 0x289   :  { %520 = vmatmul.msk.f32.vlgmr.msra.gmra.mxu2 %vm374_vm7, %v358_v24 }
 0x290   :  { %v359_v25 = vpop.trf.xlu2 }
 0x291   :  { %521 = vmatmul.msk.f32.gmra.mxu2 %vm374_vm7, %v359_v25 }
 0x30c   :  { %v398_v27 = vpop.f32.mrf.mxu2 }
 0x30d   :  { %v404_v28 = vsub.f32 %v398_v27, %v715_v45  ;;  %522 = vmatmul.msk.f32.vlgmr.msrb.gmra.mxu3 %vm81_vm1, %v398_v27 }
 0x30f   :  { %v406_v29 = vmul.f32 %v404_v28, %v404_v28 }
 0x311   :  { %v408_v30 = vsel %vm81_vm1, %v406_v29, 0.0 }
 0x312   :  { %409 = vadd.xlane.f32.xlu1 %v408_v30 }
 0x314   :  { %v401_v31 = vpop.f32.mrf.mxu2 }
 0x315   :  { %v405_v32 = vsub.f32 %v401_v31, %v691_v35  ;;  %523 = vmatmul.msk.f32.gmra.mxu3 %vm81_vm1, %v401_v31 }
 0x317   :  { %v407_v33 = vmul.f32 %v405_v32, %v405_v32 }
 0x319   :  { %v411_v34 = vsel %vm81_vm1, %v407_v33, 0.0 }
 0x31a   :  { %412 = vadd.xlane.f32.xlu0 %v411_v34 }
 0x385   :  { %v410_v36 = vpop.xlane.xlu1 %409 }
 0x386   :  { %v446_v38 = vsel %vm445_vm8, %v410_v36, 0.0 }
 0x38d   :  { %v413_v37 = vpop.xlane.xlu0 %412 }
 0x38e   :  { %v447_v45 = vsel %vm445_vm8, %v413_v37, 0.0 }
 0x38f   :  { %v448_v39 = vadd.f32 %v447_v45, %v446_v38 }
 0x390   :  { %v437_v40 = vpop.f32.mrf.mxu3 }
 0x391   :  { %443 = vst.msk [vmem:[#allocation2] sm:$0xff] %vm49_vm0, %v437_v40  ;;  %449 = vadd.xlane.f32.xlu1 %v448_v39 }
 0x398   :  { %v440_v41 = vpop.f32.mrf.mxu3 }
 0x399   :  { %444 = vst.msk [vmem:[#allocation2 + $0x8] sm:$0xff] %vm49_vm0, %v440_v41  ;;  %vm460_vm0 = vcmask 0  }
 0x39a   :  { %474 = dma.vmem_to_hbm [thread:$0]  %s467_s24, 256, %s469_s22, [#allocation3], %s598_s25, %s598_s25, %s599_s26  }
 0x404   :  { %v450_v35 = vpop.xlane.xlu1 %449 }
 0x405   :  { %v451_v42 = vrot.slane %v450_v35, 4 }
 0x407   :  { %v452_v43 = vadd.f32 %v451_v42, %v450_v35 }
 0x409   :  { %v453_v44 = vrot.slane %v452_v43, 2 }
 0x40b   :  { %v454_v46 = vadd.f32 %v453_v44, %v452_v43 }
 0x40d   :  { %v455_v47 = vrot.slane %v454_v46, 1 }
 0x40f   :  { %v456_v48 = vadd.f32 %v455_v47, %v454_v46 }
 0x411   :  { %528 = vpush %v456_v48 }
 0x442   :  { %s529_s8 = spop %528 }
 0x443   :  { %v458_v49 = vstv %s529_s8 }
 0x444   :  { %461 = vst.msk [vmem:[#allocation4] sm:$0x1] %vm460_vm0, %v458_v49 }
 0x445   :  { %487 = dma.vmem_to_hbm [thread:$0]  %s483_s28, 16, %s485_s5, [#allocation5]  }
 0x446   :  { %591 = dma.done.wait [#allocation3], 256  }
 0x447   :  { %592 = vsyncadd [#allocation3], 4294967040 }
 0x448   :  { %593 = dma.done.wait [#allocation5], 16  }
 0x449   :  { %594 = vsyncadd [#allocation5], 4294967280 }
 0x44a   :  { %498 = vsyncpa [#allocation3], 1 }
 0x44b   :  { %499 = vsyncpa [#allocation5], 1 }

</bundles_post_ra>
